<compile_context>
chip_gen: v7x
topology: tpu7x:2x2x1
jax: 0.10.0
libtpu: 0.0.40
codegen_flags: <defaults>
</compile_context>

<pallas_src>
import functools

import jax
import jax.numpy as jnp
from jax.experimental import pallas as pl
from jax.experimental.pallas import tpu as pltpu


def _round_up(x, m):
    return ((x + m - 1) // m) * m


def _bce_kernel(x_ref, t_ref, m_ref, o_ref, acc_ref, *, inv_l, n_valid_l, ragged_l):
    """One (TB, TL) tile; acc_ref is the resident (TB, 128) row accumulator."""
    k = pl.program_id(1)  # position along the L (reduction) axis

    @pl.when(k == 0)
    def _init():
        acc_ref[...] = jnp.zeros_like(acc_ref)

    # Upcast to f32 (mirrors the .float() calls in the torch forward).
    x = x_ref[...].astype(jnp.float32)
    t = t_ref[...].astype(jnp.float32)
    m = m_ref[...].astype(jnp.float32)

    # Numerically-stable BCE-with-logits, weighted by mask (reduction='none'):
    #   loss = max(x, 0) - x*t + log(1 + exp(-|x|))
    loss = (jnp.maximum(x, 0.0) - x * t + jnp.log1p(jnp.exp(-jnp.abs(x)))) * m

    tb, tl = loss.shape
    if ragged_l:
        # Last L tile extends past the array: zero the out-of-bounds columns
        # (their contents are undefined padding).  Compile-time gated, so
        # tile-aligned shapes pay nothing.
        cols = k * tl + jax.lax.broadcasted_iota(jnp.int32, (tb, tl), 1)
        loss = jnp.where(cols < n_valid_l, loss, 0.0)

    # Fold the tile into (TB, 128) with lane-group-aligned VPU adds (static
    # 128-wide slices are plain vreg selects -> no relayout, no per-step XLU
    # cross-lane reduce, no narrow masked store).
    part = loss[:, 0:128]
    for g in range(1, tl // 128):
        part = part + loss[:, g * 128:(g + 1) * 128]
    acc_ref[...] += part

    # Finalize once per row block: single cross-lane reduce + scale + store.
    # torch's mean(dim=1) divides by the ORIGINAL L regardless of mask.
    @pl.when(k == pl.num_programs(1) - 1)
    def _finalize():
        o_ref[...] = jnp.sum(acc_ref[...], axis=1, keepdims=True) * inv_l


def sigmoid_bce_loss(inputs, targets, mask, *, tb=256, tl=8192,
                     vmem_stream_budget=32 * 1024 * 1024):
    """Pallas TPU SigmoidBinaryCrossEntropyLoss.forward. Returns shape (B,) f32.

    inputs may be f32 or bf16; targets / mask may be f32 / bf16 / int8
    (they are upcast to f32 in-kernel, so 0/1 labels are exact).
    """
    B, L = inputs.shape
    assert targets.shape == (B, L) and mask.shape == (B, L)

    # Row tile: multiple of 8, and small enough that there are >=2 row blocks
    # whenever possible (keeps both v7x TensorCores busy for small batches).
    tb_target = max(8, _round_up(pl.cdiv(B, 2), 8))
    TB = min(_round_up(tb, 8), tb_target)

    # L tile: as large as possible (amortize per-grid-step overhead) while the
    # double-buffered input streams stay inside a conservative VMEM budget
    # (v7x has only 64 MiB physical VMEM).
    bytes_per_elem = (inputs.dtype.itemsize + targets.dtype.itemsize
                      + mask.dtype.itemsize)
    tl_budget = max(128, (vmem_stream_budget // (2 * TB * bytes_per_elem)) // 128 * 128)
    TL = min(_round_up(tl, 128), _round_up(L, 128), tl_budget)

    grid = (pl.cdiv(B, TB), pl.cdiv(L, TL))  # reduction (L) axis last
    ragged_l = (L % TL) != 0

    kernel = functools.partial(
        _bce_kernel, inv_l=1.0 / float(L), n_valid_l=L, ragged_l=ragged_l)

    out = pl.pallas_call(
        kernel,
        out_shape=jax.ShapeDtypeStruct((B, 1), jnp.float32),
        grid_spec=pltpu.PrefetchScalarGridSpec(
            num_scalar_prefetch=0,
            grid=grid,
            in_specs=[
                pl.BlockSpec((TB, TL), lambda i, k: (i, k)),
                pl.BlockSpec((TB, TL), lambda i, k: (i, k)),
                pl.BlockSpec((TB, TL), lambda i, k: (i, k)),
            ],
            # Same block index for every k -> output tile stays resident in
            # VMEM across the whole L sweep; it is written exactly once.
            out_specs=pl.BlockSpec((TB, 1), lambda i, k: (i, 0)),
            scratch_shapes=[pltpu.VMEM((TB, 128), jnp.float32)],
        ),
        compiler_params=pltpu.CompilerParams(
            dimension_semantics=("parallel", "arbitrary"),
            vmem_limit_bytes=48 * 1024 * 1024,
        ),
    )(inputs, targets, mask)

    return out[:, 0]


def _reference(inputs, targets, mask):
    x = inputs.astype(jnp.float32)
    t = targets.astype(jnp.float32)
    m = mask.astype(jnp.float32)
    loss = (jnp.maximum(x, 0.0) - x * t + jnp.log1p(jnp.exp(-jnp.abs(x)))) * m
    return jnp.mean(loss, axis=1)


if __name__ == "__main__":
    key = jax.random.PRNGKey(0)

    # Case 1: tile-aligned shapes; tiny tiles force a (2, 3) grid so the
    # init / accumulate / finalize path is exercised.  bf16 logits + int8
    # targets/mask exercise the reduced-bandwidth caller contract.
    B, L = 16, 384
    k1, k2, k3, k4 = jax.random.split(key, 4)
    logits = (jax.random.normal(k1, (B, L), dtype=jnp.float32) * 2.0).astype(jnp.bfloat16)
    targets = (jax.random.uniform(k2, (B, L)) > 0.5).astype(jnp.int8)
    mask = (jax.random.uniform(k3, (B, L)) > 0.25).astype(jnp.int8)

    out = jax.block_until_ready(sigmoid_bce_loss(logits, targets, mask, tb=8, tl=128))
    ref = _reference(logits, targets, mask)
    assert out.shape == (B,)
    assert jnp.allclose(out, ref, rtol=1e-4, atol=1e-5), (out, ref)

    # Case 2: ragged shapes + f32 logits; exercises the unpadded cdiv grid and
    # the in-kernel last-tile column mask (no jnp.pad copies anywhere).
    B2, L2 = 13, 300
    k5, k6, k7 = jax.random.split(k4, 3)
    logits2 = jax.random.normal(k5, (B2, L2), dtype=jnp.float32)
    targets2 = (jax.random.uniform(k6, (B2, L2)) > 0.5).astype(jnp.int8)
    mask2 = (jax.random.uniform(k7, (B2, L2)) > 0.25).astype(jnp.int8)

    out2 = jax.block_until_ready(sigmoid_bce_loss(logits2, targets2, mask2, tb=8, tl=128))
    ref2 = _reference(logits2, targets2, mask2)
    assert out2.shape == (B2,)
    assert jnp.allclose(out2, ref2, rtol=1e-4, atol=1e-5), (out2, ref2)

    # Case 3: default (large) tile path; TB/TL auto-clip to the small problem,
    # and the 2-row-block rule still yields a (2, 1) grid.
    out3 = jax.block_until_ready(sigmoid_bce_loss(logits, targets, mask))
    assert out3.shape == (B,)
    assert jnp.allclose(out3, ref, rtol=1e-4, atol=1e-5), (out3, ref)

    print("KERNEL_OK")
</pallas_src>

<mosaic_0001>
module attributes {stable_mosaic.version = 11 : i64} {
  func.func @_bce_kernel(%arg0: i32, %arg1: i32, %arg2: memref<8x128xbf16, #tpu.memory_space<vmem>>, %arg3: memref<8x128xi8, #tpu.memory_space<vmem>>, %arg4: memref<8x128xi8, #tpu.memory_space<vmem>>, %arg5: memref<8x1xf32, #tpu.memory_space<vmem>>, %arg6: memref<8x128xf32, #tpu.memory_space<vmem>>) attributes {dimension_semantics = [#tpu.dimension_semantics<parallel>, #tpu.dimension_semantics<arbitrary>], iteration_bounds = array<i64: 2, 3>, scalar_prefetch = 0 : i64, scratch_operands = 1 : i64, tpu.core_type = #tpu.core_type<tc>, window_params = [{transform_indices = @transform_0, window_bounds = array<i64: 8, 128>}, {transform_indices = @transform_1, window_bounds = array<i64: 8, 128>}, {transform_indices = @transform_2, window_bounds = array<i64: 8, 128>}, {transform_indices = @transform_3, window_bounds = array<i64: 8, 1>}]} {
    %c0_i32 = arith.constant 0 : i32
    %0 = arith.cmpi eq, %arg1, %c0_i32 : i32
    %1 = arith.extui %0 : i1 to i32
    %c0_i32_0 = arith.constant 0 : i32
    %2 = arith.cmpi ne, %1, %c0_i32_0 : i32
    scf.if %2 {
      %cst_12 = arith.constant 0.000000e+00 : f32
      %26 = vector.broadcast %cst_12 : f32 to vector<8x128xf32>
      %c0_13 = arith.constant 0 : index
      %c0_14 = arith.constant 0 : index
      %27 = vector.load %arg6[%c0_13, %c0_14] : memref<8x128xf32, #tpu.memory_space<vmem>>, vector<8x128xf32>
      tpu.vector_store %arg6[%c0_13, %c0_14], %26 {strides = array<i32>} : memref<8x128xf32, #tpu.memory_space<vmem>>, vector<8x128xf32>,
    } else {
    }
    %c0 = arith.constant 0 : index
    %c0_1 = arith.constant 0 : index
    %3 = vector.load %arg2[%c0, %c0_1] : memref<8x128xbf16, #tpu.memory_space<vmem>>, vector<8x128xbf16>
    %4 = arith.extf %3 : vector<8x128xbf16> to vector<8x128xf32>
    %c0_2 = arith.constant 0 : index
    %c0_3 = arith.constant 0 : index
    %5 = vector.load %arg3[%c0_2, %c0_3] : memref<8x128xi8, #tpu.memory_space<vmem>>, vector<8x128xi8>
    %6 = arith.sitofp %5 : vector<8x128xi8> to vector<8x128xf32>
    %c0_4 = arith.constant 0 : index
    %c0_5 = arith.constant 0 : index
    %7 = vector.load %arg4[%c0_4, %c0_5] : memref<8x128xi8, #tpu.memory_space<vmem>>, vector<8x128xi8>
    %8 = arith.sitofp %7 : vector<8x128xi8> to vector<8x128xf32>
    %cst = arith.constant 0.000000e+00 : f32
    %9 = vector.broadcast %cst : f32 to vector<8x128xf32>
    %10 = arith.maximumf %4, %9 : vector<8x128xf32>
    %11 = arith.mulf %4, %6 : vector<8x128xf32>
    %12 = arith.subf %10, %11 : vector<8x128xf32>
    %13 = math.absf %4 : vector<8x128xf32>
    %cst_6 = arith.constant 0.000000e+00 : f32
    %14 = vector.broadcast %cst_6 : f32 to vector<8x128xf32>
    %15 = arith.subf %14, %13 : vector<8x128xf32>
    %16 = math.exp %15 : vector<8x128xf32>
    %17 = math.log1p %16 : vector<8x128xf32>
    %18 = arith.addf %12, %17 : vector<8x128xf32>
    %19 = arith.mulf %18, %8 : vector<8x128xf32>
    %c0_7 = arith.constant 0 : index
    %c0_8 = arith.constant 0 : index
    %20 = vector.load %arg6[%c0_7, %c0_8] : memref<8x128xf32, #tpu.memory_space<vmem>>, vector<8x128xf32>
    %21 = arith.addf %20, %19 : vector<8x128xf32>
    %c0_9 = arith.constant 0 : index
    %c0_10 = arith.constant 0 : index
    %22 = vector.load %arg6[%c0_9, %c0_10] : memref<8x128xf32, #tpu.memory_space<vmem>>, vector<8x128xf32>
    tpu.vector_store %arg6[%c0_9, %c0_10], %21 {strides = array<i32>} : memref<8x128xf32, #tpu.memory_space<vmem>>, vector<8x128xf32>,
    %c2_i32 = arith.constant 2 : i32
    %23 = arith.cmpi eq, %arg1, %c2_i32 : i32
    %24 = arith.extui %23 : i1 to i32
    %c0_i32_11 = arith.constant 0 : i32
    %25 = arith.cmpi ne, %24, %c0_i32_11 : i32
    scf.if %25 {
      %c0_12 = arith.constant 0 : index
      %c0_13 = arith.constant 0 : index
      %26 = vector.load %arg6[%c0_12, %c0_13] : memref<8x128xf32, #tpu.memory_space<vmem>>, vector<8x128xf32>
      %cst_14 = arith.constant dense<0.000000e+00> : vector<8xf32>
      %27 = vector.multi_reduction <add>, %26, %cst_14 [1] : vector<8x128xf32> to vector<8xf32>
      %28 = vector.shape_cast %27 : vector<8xf32> to vector<8x1xf32>
      %cst_15 = arith.constant 0.00260416674 : f32
      %29 = vector.broadcast %cst_15 : f32 to vector<8x1xf32>
      %30 = arith.mulf %28, %29 : vector<8x1xf32>
      %c0_16 = arith.constant 0 : index
      %c0_17 = arith.constant 0 : index
      %31 = vector.load %arg5[%c0_16, %c0_17] : memref<8x1xf32, #tpu.memory_space<vmem>>, vector<8x1xf32>
      tpu.vector_store %arg5[%c0_16, %c0_17], %30 {strides = array<i32>} : memref<8x1xf32, #tpu.memory_space<vmem>>, vector<8x1xf32>,
    } else {
    }
    return
  }
  func.func @transform_0(%arg0: i32, %arg1: i32) -> (i32, i32) {
    %c0_i32 = arith.constant 0 : i32
    return %arg0, %arg1 : i32, i32
  }
  func.func @transform_1(%arg0: i32, %arg1: i32) -> (i32, i32) {
    %c0_i32 = arith.constant 0 : i32
    return %arg0, %arg1 : i32, i32
  }
  func.func @transform_2(%arg0: i32, %arg1: i32) -> (i32, i32) {
    %c0_i32 = arith.constant 0 : i32
    return %arg0, %arg1 : i32, i32
  }
  func.func @transform_3(%arg0: i32, %arg1: i32) -> (i32, i32) {
    %c0_i32 = arith.constant 0 : i32
    %c0_i32_0 = arith.constant 0 : i32
    return %arg0, %c0_i32 : i32, i32
  }
}

</mosaic_0001>

<bundles_post_ra>
// kernel: tpu_custom_call.1
= control target key start
LH: loop header
LB: loop body
LE: loop exit
PB: predicated region body
PF: predicated region fallthrough
CT: control target
= control target key end

     0   :  { %s980_s0 = inlined_call_operand.hbm [shape: bf16[16,384], index: 0, kind: input, shape index: {}]   ;;  %s981_s1 = inlined_call_operand.hbm [shape: s8[16,384], index: 1, kind: input, shape index: {}]   ;;  %s982_s2 = inlined_call_operand.hbm [shape: s8[16,384], index: 2, kind: input, shape index: {}]   ;;  %s983_s3 = inlined_call_operand.vmem [shape: f32[16,1], index: 3, kind: output, shape index: {}]  }
   0x1   :  { %990 = sst [smem:[#allocation12_spill]] %s981_s1 }
   0x2   :  { %8 = vsyncpa [#allocation4], 0 }
   0x3   :  { %10 = vsyncpa [#allocation4 + $0x1], 0 }
   0x4   :  { %11 = vsyncpa [#allocation6], 0 }
   0x5   :  { %13 = vsyncpa [#allocation6 + $0x1], 0  ;;  %s744_s12 = smov 0   ;;  %s746_s13 = smov 0  }
   0x6   :  { %s748_s14 = smov 0   ;;  %s750_s15 = smov 0  }
   0x7   :  { %s752_s16 = smov 0   ;;  %s754_s17 = smov 0  }
   0x8   :  { %s756_s18 = smov 0   ;;  %s758_s19 = smov 0  }
   0x9 LB: > { %s984_s20 = sadd.s32 4294967295, %s718_s19   ;;  %s28_s21 = sadd.s32 1, %s710_s17  ;;  %s718_s19 = sphi %s758_s19, %s19_s19   ;;  %s714_s18 = sphi %s756_s18, %s1011_s18   ;;  %s710_s17 = sphi %s754_s17, %s1010_s17   ;;  %s706_s16 = sphi %s752_s16, %s1009_s16   ;;  %s702_s15 = sphi %s750_s15, %s1008_s15   ;;  %s698_s14 = sphi %s748_s14, %s1007_s14   ;;  %s694_s13 = sphi %s746_s13, %s1006_s13   ;;  %s690_s12 = sphi %s744_s12, %s1005_s12  }
   0xa   : > { %p29_p0 = scmp.ge.s32.totalorder %s28_s21, 3  ;;  %s31_s22 = sadd.s32 1, %s714_s18 }
   0xb   : > { %s40_s23 = sadd.s32 1, %s698_s14  ;;  %p47_p1 = scmp.ne.s32.totalorder %s698_s14, %s694_s13 }
   0xc   : > { %s1013_s21 = smov (%p29_p0, %s28_s21), 0  ;;  %s1015_s22 = smov (!%p29_p0, %s31_s22), %s714_s18 }
   0xd   : > { %991 = sst [smem:[#allocation10_spill]] %s1013_s21  ;;  %s36_s24 = ssub.s32 %s710_s17, %s1013_s21 }
   0xe   : > { %p48_p2 = scmp.eq.s32.totalorder %s718_s19, 0  ;;  %p33_p3 = scmp.ge.s32.totalorder %s1015_s22, 2 }
   0xf   : > { %p53_p4 = scmp.ne.s32.totalorder %s694_s13, %s690_s12  ;;  %p54_p6 = scmp.eq.s32.totalorder %s984_s20, 0 }
  0x10   : > { %p49_p5 = por %p48_p2, %p47_p1  ;;  %s1017_s22 = smov (%p33_p3, %s1015_s22), 0 }
  0x11   : > { %992 = sst [smem:[#allocation11_spill]] %s1017_s22  ;;  %p799_p7 = por %p54_p6, %p53_p4 }
  0x12   : > { %s35_s26 = ssub.s32 %s714_s18, %s1017_s22  ;;  %p488_p8 = scmp.lt.s32.totalorder %s718_s19, 6 }
  0x13   : > { %s993_s25 = scalar_select %p799_p7, 1, 0 }
  0x14   : > { %s37_s27 = sor.u32 %s36_s24, %s35_s26  ;;  %s807_s28 = sand.u32 1, %s698_s14  }
  0x15   : > { %p38_p9 = scmp.eq.s32.totalorder %s37_s27, 0  ;;  %s469_s29 = smul.u32 3, %s714_s18 }
  0x16   : > { %p810_p10 = pnand %p488_p8, %p49_p5  ;;  %s179_s4 = sand.u32 1, %s718_s19  }
  0x17   : > { %s816_s5 = scalar_select %p38_p9, %s698_s14, %s40_s23  }
  0x18   : > { %s994_s30 = scalar_select %p810_p10, 1, 0 }
  0x19   : > { %s819_s6 = sadd.s32 %s710_s17, %s469_s29  ;;  %s986_s7 = sshll.u32 %s807_s28, 1 }
  0x1a   : > { %s457_s8 = sshll.u32 %s819_s6, 5  ;;  %s995_s1 = sld [smem:[#allocation12_spill]] }
  0x1b   : > { %s183_s12 = scalar_lea.vmem [#allocation5], %s986_s7  ;;  %s834_s24 = scalar_lea.sflag [#allocation6], %s179_s4 }
  0x1c   : > { %s192_s23 = sshll.u32 %s183_s12, 4  ;;  %p840_p12 = pneg %p810_p10  ;;  %s832_s23 = int_to_ptr.vmem [resolvable:$true] %s192_s23 }
  0x20   : > { %s828_s11 = scalar_lea.hbm %s995_s1, %s457_s8  ;;  %s563_s10 = scalar_lea.hbm %s995_s1, 192 }
  0x21   : > { %s558_s26 = scalar_lea.hbm %s828_s11, 32  ;;  %p564_p1 = scmp.lt.u32.totalorder %s828_s11, %s995_s1 }
  0x22   : > { %p559_p11 = scmp.ne.s32.totalorder %s828_s11, %s558_s26  ;;  %p565_p2 = scmp.lt.u32.totalorder %s563_s10, %s558_s26 }
  0x23   : > { %p567_p4 = scmp.lt.u32.totalorder %s558_s26, %s828_s11 }
  0x24   : > { %p561_p13 = pnand %p840_p12, %p559_p11  ;;  %p566_p3 = por %p565_p2, %p564_p1 }
  0x26   : > { %p562_p0 = pneg %p561_p13  ;;  %p568_p5 = por %p567_p4, %p566_p3 }
  0x28   : > { %p569_p6 = pnand %p568_p5, %p562_p0 }
  0x2a   : > { %572 = shalt.err (!%p569_p6)
}
  0x2b   : > { %s573_s4 = scalar_lea.vmem %s832_s23, 32  ;;  %s720_s29 = smov [#allocation5]  }
  0x2c   : > { %p574_p8 = scmp.ne.s32.totalorder %s832_s23, %s573_s4  ;;  %s578_s9 = sshll.u32 %s720_s29, 4  ;;  %s579_s9 = int_to_ptr.vmem [resolvable:$false] %s578_s9 }
  0x2d   : > { %s580_s20 = scalar_lea.vmem %s579_s9, 64  ;;  %p581_p13 = scmp.lt.s32.totalorder %s832_s23, %s579_s9 }
  0x2e   : > { %p576_p9 = pnand %p574_p8, %p840_p12  ;;  %p582_p7 = scmp.lt.s32.totalorder %s580_s20, %s573_s4 }
  0x30   : > { %p577_p11 = pneg %p576_p9  ;;  %p583_p1 = por %p582_p7, %p581_p13 }
  0x32   : > { %p584_p2 = pnand %p583_p1, %p577_p11 }
  0x34   : > { %587 = shalt.err (!%p584_p2)
}
  0x35   : > { %484 = dma.hbm_to_vmem [thread:$0]  (!%p810_p10), %s828_s11, 32, %s832_s23, %s834_s24  }
  0x36   : > { %s869_s12 = scalar_lea.hbm %s982_s2, %s457_s8  ;;  %p460_p7 = scmp.ge.s32.totalorder %s718_s19, 1 }
  0x37   : > { %p217_p0 = scmp.lt.s32.totalorder %s718_s19, 7  ;;  %s454_s29 = sshll.u32 %s807_s28, 2 }
  0x38   : > { %s455_s9 = sshll.u32 %s819_s6, 6  ;;  %s163_s11 = scalar_lea.vmem [#allocation3], %s454_s29 }
  0x39   : > { %p873_p3 = pnand %p460_p7, %p217_p0  ;;  %s882_s1 = scalar_lea.hbm %s980_s0, %s455_s9 }
  0x3a   : > { %s172_s8 = sshll.u32 %s163_s11, 4  ;;  %s998_s23 = sshll.u32 %s807_s28, 1  ;;  %s884_s8 = int_to_ptr.vmem [resolvable:$true] %s172_s8 }
  0x3b   : > { %s997_s4 = scalar_select %p873_p3, 1, 0 }
  0x3c   : > { %s888_s26 = scalar_lea.vmem [#allocation7], %s998_s23  ;;  %s160_s22 = scalar_lea.sflag [#allocation4], %s807_s28 }
  0x3d   : > { %s212_s10 = sshll.u32 %s888_s26, 4  ;;  %s588_s6 = scalar_lea.hbm %s882_s1, 64  ;;  %s213_s10 = int_to_ptr.vmem [resolvable:$true] %s212_s10 }
  0x3e   : > { %p589_p4 = scmp.ne.s32.totalorder %s882_s1, %s588_s6  ;;  %s593_s20 = scalar_lea.hbm %s980_s0, 384 }
  0x3f   : > { %p594_p8 = scmp.lt.u32.totalorder %s882_s1, %s980_s0  ;;  %p595_p9 = scmp.lt.u32.totalorder %s593_s20, %s588_s6 }
  0x40   : > { %p591_p5 = pnand %p589_p4, %p840_p12  ;;  %p597_p13 = scmp.lt.u32.totalorder %s588_s6, %s882_s1 }
  0x41   : > { %p596_p11 = por %p595_p9, %p594_p8 }
  0x42   : > { %p592_p6 = pneg %p591_p5 }
  0x43   : > { %p598_p1 = por %p597_p13, %p596_p11 }
  0x45   : > { %p599_p2 = pnand %p598_p1, %p592_p6 }
  0x47   : > { %602 = shalt.err (!%p599_p2)
}
  0x48   : > { %s603_s28 = scalar_lea.vmem %s884_s8, 64  ;;  %s721_s11 = smov [#allocation3]  }
  0x49   : > { %p604_p7 = scmp.ne.s32.totalorder %s884_s8, %s603_s28  ;;  %s608_s23 = sshll.u32 %s721_s11, 4  ;;  %s609_s23 = int_to_ptr.vmem [resolvable:$false] %s608_s23 }
  0x4a   : > { %s610_s21 = scalar_lea.vmem %s609_s23, 128  ;;  %p611_p5 = scmp.lt.s32.totalorder %s884_s8, %s609_s23 }
  0x4b   : > { %p606_p0 = pnand %p604_p7, %p840_p12  ;;  %p612_p3 = scmp.lt.s32.totalorder %s610_s21, %s603_s28 }
  0x4d   : > { %p607_p4 = pneg %p606_p0  ;;  %p613_p8 = por %p612_p3, %p611_p5 }
  0x4f   : > { %p614_p9 = pnand %p613_p8, %p607_p4 }
  0x51   : > { %617 = shalt.err (!%p614_p9)
}
  0x52   : > { %481 = dma.hbm_to_vmem [thread:$0]  (!%p810_p10), %s882_s1, 64, %s884_s8, %s160_s22  }
  0x53   : > { %s618_s6 = scalar_lea.hbm %s869_s12, 32  ;;  %s623_s20 = scalar_lea.hbm %s982_s2, 192 }
  0x54   : > { %p619_p6 = scmp.ne.s32.totalorder %s869_s12, %s618_s6  ;;  %p624_p13 = scmp.lt.u32.totalorder %s869_s12, %s982_s2 }
  0x55   : > { %p625_p1 = scmp.lt.u32.totalorder %s623_s20, %s618_s6  ;;  %p627_p7 = scmp.lt.u32.totalorder %s618_s6, %s869_s12 }
  0x56   : > { %p621_p11 = pnand %p619_p6, %p840_p12 }
  0x57   : > { %p626_p2 = por %p625_p1, %p624_p13 }
  0x58   : > { %p622_p3 = pneg %p621_p11 }
  0x59   : > { %p628_p0 = por %p627_p7, %p626_p2 }
  0x5b   : > { %p629_p4 = pnand %p628_p0, %p622_p3 }
  0x5d   : > { %632 = shalt.err (!%p629_p4)
}
  0x5e   : > { %s633_s1 = scalar_lea.vmem %s213_s10, 32  ;;  %s722_s22 = smov [#allocation7]  }
  0x5f   : > { %p634_p5 = scmp.ne.s32.totalorder %s213_s10, %s633_s1  ;;  %s638_s8 = sshll.u32 %s722_s22, 4  ;;  %s639_s8 = int_to_ptr.vmem [resolvable:$false] %s638_s8 }
  0x60   : > { %s640_s26 = scalar_lea.vmem %s639_s8, 64  ;;  %p641_p6 = scmp.lt.s32.totalorder %s213_s10, %s639_s8 }
  0x61   : > { %p636_p8 = pnand %p634_p5, %p840_p12  ;;  %p642_p11 = scmp.lt.s32.totalorder %s640_s26, %s633_s1 }
  0x63   : > { %p637_p9 = pneg %p636_p8  ;;  %p643_p10 = por %p642_p11, %p641_p6 }
  0x65   : > { %p644_p1 = pnand %p643_p10, %p637_p9 }
  0x67   : > { %647 = shalt.err (!%p644_p1)
}
  0x68   : > { %p999_p13 = scmp.ne.s32.totalorder %s994_s30, 0  ;;  %p1000_p3 = scmp.ne.s32.totalorder %s997_s4, 0 }
  0x69   : > { %s223_s27 = sand.u32 (!%p1000_p3), 1, %s694_s13   ;;  %p1001_p12 = scmp.ne.s32.totalorder (!%p1000_p3), %s993_s25, 0 }
  0x6a   : > { %487 = dma.hbm_to_vmem [thread:$0]  (!%p999_p13), %s869_s12, 32, %s213_s10, %s834_s24  }
  0x6b   : > { %221 = sbr.rel (%p1000_p3) target bundleno = 324 (0x144), region = 32  ;;  %s461_s11 = sshll.u32 (!%p1000_p3), %s223_s27, 2 }
  0x6c   : > { %s224_s23 = scalar_lea.sflag (!%p1000_p3), [#allocation4], %s223_s27  ;;  %s227_s21 = scalar_lea.vmem (!%p1000_p3), [#allocation3], %s461_s11 }
  0x72   : > { %681 = dma.done.wait (%p1001_p12), %s224_s23, 64  }
  0x73   : > { %683 = vsyncadd (%p1001_p12), %s224_s23, 4294967232  ;;  %s1002_s6 = sadd.s32 4294967295, %s718_s19   ;;  %s462_s7 = sshll.u32 %s223_s27, 1 }
  0x74   : > { %s232_s30 = sand.u32 1, %s1002_s6   ;;  %s236_s12 = scalar_lea.vmem [#allocation5], %s462_s7 }
  0x75   : > { %s233_s24 = scalar_lea.sflag [#allocation6], %s232_s30 }
  0x76   : > { %685 = dma.done.wait (%p1001_p12), %s233_s24, 64  }
  0x77   : > { %687 = vsyncadd (%p1001_p12), %s233_s24, 4294967232  ;;  %p277_p10 = scmp.lt.s32.totalorder %s706_s16, 1  ;;  %s245_s29 = scalar_lea.vmem [#allocation7], %s462_s7 }
  0x78   : > { %p465_p2 = scmp.ne.s32.totalorder %s702_s15, 0 }
  0x79   : > { %s1019_s16 = smov (!%p277_p10, %s706_s16), 1  ;;  %v723_v0 = vmov (!%p465_p2), 0.0  }
  0x7a   : > { %s464_s4 = sshll.u32 %s1019_s16, 3  ;;  %284 = sbr.rel (%p465_p2) target bundleno = 129 (0x81), region = 48  ;;  %285 = vst [vmem:[#allocation2] sm:$0xff] (!%p465_p2), %v723_v0 }
  0x7b   : > { %s951_s20 = scalar_lea.vmem %s983_s3, %s464_s4 }
  0x81 PF: > { %v286_v1 = vld [vmem:[%s227_s21] sm:$0xf]  ;;  %v288_v6 = vld [vmem:[%s236_s12] sm:$0x3]  ;;  %v291_v12 = vld [vmem:[%s245_s29] sm:$0x3] }
  0x82   : > { %v287_v2 = vunpack.c.l.bf16 %v286_v1  ;;  %v289_v8 = vunpack.c.0.s8 %v288_v6  ;;  %v292_v17 = vunpack.c.0.s8 %v291_v12  ;;  %v312_v25 = vld [vmem:[#allocation2] sm:$0xff]  ;;  %p466_p7 = scmp.ne.s32.totalorder %s702_s15, 2 }
  0x83   : > { %vm323_vm1 = vcmask (!%p466_p7), 7168  }
  0x84   : > { %v297_v3 = vand.u32 2147483647, %v287_v2  ;;  %v290_v11 = vcvt.s32.f32 %v289_v8  ;;  %v294_v14 = vmax.f32 %v287_v2, 0.0  ;;  %v293_v22 = vcvt.s32.f32 %v292_v17 }
  0x86   : > { %v298_v4 = vsub.f32 0.0, %v297_v3  ;;  %v295_v15 = vmul.f32 %v290_v11, %v287_v2 }
  0x88   : > { %v299_v5 = vmul.f32 1.442695, %v298_v4  ;;  %v296_v20 = vsub.f32 %v294_v14, %v295_v15 }
  0x8a   : > { %554 = vpow2.f32 %v299_v5 }
  0x94   : > { %v555_v7 = vpop.eup %554 }
  0x95   : > { %v301_v9 = vadd.f32 1.0, %v555_v7  ;;  %v304_v10 = vmul.f32 -0.5, %v555_v7  ;;  %v307_v16 = vand.u32 2147483647, %v555_v7 }
  0x97   : > { %556 = vlog2.f32 %v301_v9  ;;  %v305_v13 = vadd.f32 1.0, %v304_v10  ;;  %vm308_vm0 = vcmp.lt.f32.partialorder %v307_v16, 0.0004427343 }
  0x99   : > { %v306_v18 = vmul.f32 %v555_v7, %v305_v13 }
  0xa1   : > { %v557_v19 = vpop.eup %556 }
  0xa2   : > { %v303_v21 = vmul.f32 0.6931472, %v557_v19 }
  0xa4   : > { %v309_v23 = vsel %vm308_vm0, %v306_v18, %v303_v21 }
  0xa5   : > { %v310_v24 = vadd.f32 %v309_v23, %v296_v20  ;;  %318 = sbr.rel (%p466_p7) target bundleno = 324 (0x144), region = 52 }
  0xa7   : > { %v311_v26 = vmul.f32 %v310_v24, %v293_v22 }
  0xa9   : > { %v313_v27 = vadd.f32 %v312_v25, %v311_v26 }
  0xab   : > { %314 = vst [vmem:[#allocation2] sm:$0xff] %v313_v27 }
  0xb2   : > { %v319_v28 = vld [vmem:[#allocation2] sm:$0xff] }
  0xb3   : > { %320 = vadd.xlane.f32.xlu0 %v319_v28 }
 0x140   : > { %v321_v29 = vpop.xlane.xlu0 %320 }
 0x141   : > { %v322_v30 = vmul.f32 0.0026041667, %v321_v29 }
 0x143   : > { %324 = vst.msk [vmem:[%s951_s20] sm:$0xff] %vm323_vm1, %v322_v30 }
 0x144 PF: > { %s19_s19 = sadd.s32 1, %s718_s19   ;;  %s1003_s25 = sld [smem:[#allocation10_spill]] }
 0x145   : > { %p16_p0 = scmp.ge.s32.totalorder %s19_s19, 8   ;;  %s1004_s28 = sld [smem:[#allocation11_spill]] }
 0x146   : > { %s1005_s12 = smov %s694_s13  ;;  %s1006_s13 = smov %s698_s14 }
 0x147   : > { %s1007_s14 = smov %s816_s5  ;;  %s1008_s15 = smov %s710_s17 }
 0x148   : > { %s1009_s16 = smov %s714_s18  ;;  %18 = sbr.rel (!%p16_p0) target bundleno = 9 (0x9), region = 104 }
 0x14a   : > { %s1010_s17 = smov %s1003_s25 }
 0x14b   : > { %s1011_s18 = smov %s1004_s28 }
 0x14f   :  { %344 = vsyncpa [#allocation4], 1 }
 0x150   :  { %346 = vsyncpa [#allocation4 + $0x1], 1 }
 0x151   :  { %347 = vsyncpa [#allocation6], 1 }
 0x152   :  { %349 = vsyncpa [#allocation6 + $0x1], 1 }

</bundles_post_ra>
